<compile_context>
chip_gen: v6e
topology: v6e:2x2x1
jax: 0.10.0
libtpu: 0.0.40
codegen_flags: <defaults>
</compile_context>

<pallas_src>
import jax
import jax.numpy as jnp
import numpy as np
from jax.experimental import pallas as pl
from jax.experimental.pallas import tpu as pltpu


def policy_net_kernel(x_ref, w1_ref, b1_ref, w2_ref, b2_ref, w3_ref, b3_ref, out_ref):
    # x_ref: (state_dim, TILE_B) -- batch on lanes.
    x = x_ref[...]

    # Layer 1: Linear + ReLU   (hid1, state_dim) @ (state_dim, TILE_B)
    h1 = jnp.dot(w1_ref[...], x, preferred_element_type=jnp.float32) + b1_ref[...]
    h1 = jnp.maximum(h1, 0.0)

    # Layer 2: Linear + ReLU   (hid2, hid1) @ (hid1, TILE_B)
    h2 = jnp.dot(w2_ref[...], h1, preferred_element_type=jnp.float32) + b2_ref[...]
    h2 = jnp.maximum(h2, 0.0)

    # Output layer: Linear (identity activation)  (action_dim, hid2) @ (hid2, TILE_B)
    logits = jnp.dot(w3_ref[...], h2, preferred_element_type=jnp.float32) + b3_ref[...]

    # Softmax over the action dimension (axis 0 in this transposed layout ==
    # PyTorch dim=1 of the (B, action_dim) output).
    m = jnp.max(logits, axis=0, keepdims=True)
    e = jnp.exp(logits - m)
    denom = jnp.sum(e, axis=0, keepdims=True)
    # Approx reciprocal on the EUP (separate issue slot) + one Newton step for
    # near-exact accuracy at negligible VALU cost.
    inv = pl.reciprocal(denom, approx=True)
    inv = inv * (2.0 - denom * inv)
    out_ref[...] = (e * inv).astype(out_ref.dtype)


def policy_net_forward(s, params, *, tile_b=1024):
    """s: (B, state_dim) float32.  params: w_i (out,in), b_i (out,1).  -> (B, action_dim)."""
    B, state_dim = s.shape
    action_dim = params["w3"].shape[0]

    # Pad batch up to a lane-dense multiple of 128, then to a multiple of the tile.
    b_pad = ((B + 127) // 128) * 128
    tb = min(tile_b, b_pad)
    b_pad = ((b_pad + tb - 1) // tb) * tb
    n_tiles = b_pad // tb

    # Transpose so batch is the lane (last) axis; zero-pad the extra columns
    # (layout plumbing only -- the padded columns are discarded on return).
    x = jnp.pad(s, ((0, b_pad - B), (0, 0))).T

    resident = lambda i: (0, 0)  # weights/biases: DMA'd once, stay resident in VMEM
    out_t = pl.pallas_call(
        policy_net_kernel,
        out_shape=jax.ShapeDtypeStruct((action_dim, b_pad), jnp.float32),
        grid_spec=pltpu.PrefetchScalarGridSpec(
            num_scalar_prefetch=0,
            grid=(n_tiles,),
            in_specs=[
                pl.BlockSpec((state_dim, tb), lambda i: (0, i)),          # activation stream
                pl.BlockSpec(params["w1"].shape, resident),
                pl.BlockSpec(params["b1"].shape, resident),
                pl.BlockSpec(params["w2"].shape, resident),
                pl.BlockSpec(params["b2"].shape, resident),
                pl.BlockSpec(params["w3"].shape, resident),
                pl.BlockSpec(params["b3"].shape, resident),
            ],
            out_specs=pl.BlockSpec((action_dim, tb), lambda i: (0, i)),   # lane-dense store
        ),
        compiler_params=pltpu.CompilerParams(
            dimension_semantics=("parallel",),  # batch tiles shard across TCs on v7x
        ),
    )(x, params["w1"], params["b1"], params["w2"], params["b2"],
      params["w3"], params["b3"])

    return out_t[:, :B].T  # back to (B, action_dim)


def init_params(key, state_dim, hid_shape, action_dim):
    """Deterministic synthetic init (mimics nn.Linear uniform fan-in init).
    Weights stored as (out_features, in_features); biases as (out_features, 1)."""
    layers = [state_dim] + list(hid_shape) + [action_dim]
    params = {}
    keys = jax.random.split(key, 2 * (len(layers) - 1))
    for i in range(len(layers) - 1):
        fan_in, fan_out = layers[i], layers[i + 1]
        bound = 1.0 / np.sqrt(fan_in)
        params[f"w{i+1}"] = jax.random.uniform(
            keys[2 * i], (fan_out, fan_in), jnp.float32, -bound, bound)
        params[f"b{i+1}"] = jax.random.uniform(
            keys[2 * i + 1], (fan_out, 1), jnp.float32, -bound, bound)
    return params


def reference_forward(s, params):
    h1 = jnp.maximum(s @ params["w1"].T + params["b1"].T, 0.0)
    h2 = jnp.maximum(h1 @ params["w2"].T + params["b2"].T, 0.0)
    logits = h2 @ params["w3"].T + params["b3"].T
    return jax.nn.softmax(logits, axis=1)


if __name__ == "__main__":
    key = jax.random.PRNGKey(0)
    k_s, k_p = jax.random.split(key)

    B, state_dim, hid_shape, action_dim = 8, 16, (32, 32), 8
    s = jax.random.normal(k_s, (B, state_dim), dtype=jnp.float32)
    params = init_params(k_p, state_dim, hid_shape, action_dim)

    probs = policy_net_forward(s, params)
    probs = jax.block_until_ready(probs)

    ref = reference_forward(s, params)
    # Newton-refined reciprocal -> tight tolerances are fine.
    np.testing.assert_allclose(np.asarray(probs), np.asarray(ref), rtol=1e-4, atol=1e-5)
    np.testing.assert_allclose(np.asarray(probs).sum(axis=1), np.ones(B),
                               rtol=1e-4, atol=1e-5)

    # also exercise a multi-tile batch to validate the grid / weight-residency path
    B2 = 3000
    s2 = jax.random.normal(jax.random.PRNGKey(1), (B2, state_dim), dtype=jnp.float32)
    probs2 = jax.block_until_ready(policy_net_forward(s2, params))
    ref2 = reference_forward(s2, params)
    np.testing.assert_allclose(np.asarray(probs2), np.asarray(ref2), rtol=1e-4, atol=1e-5)

    print("KERNEL_OK")
</pallas_src>

<mosaic_0001>
module attributes {stable_mosaic.version = 11 : i64} {
  func.func @policy_net_kernel(%arg0: i32, %arg1: memref<16x128xf32, #tpu.memory_space<vmem>>, %arg2: memref<32x16xf32, #tpu.memory_space<vmem>>, %arg3: memref<32x1xf32, #tpu.memory_space<vmem>>, %arg4: memref<32x32xf32, #tpu.memory_space<vmem>>, %arg5: memref<32x1xf32, #tpu.memory_space<vmem>>, %arg6: memref<8x32xf32, #tpu.memory_space<vmem>>, %arg7: memref<8x1xf32, #tpu.memory_space<vmem>>, %arg8: memref<8x128xf32, #tpu.memory_space<vmem>>) attributes {dimension_semantics = [#tpu.dimension_semantics<parallel>], iteration_bounds = array<i64: 1>, scalar_prefetch = 0 : i64, scratch_operands = 0 : i64, tpu.core_type = #tpu.core_type<tc>, window_params = [{transform_indices = @transform_0, window_bounds = array<i64: 16, 128>}, {pipeline_mode = #tpu.pipeline_mode<synchronous>, transform_indices = @transform_1, window_bounds = array<i64: 32, 16>}, {pipeline_mode = #tpu.pipeline_mode<synchronous>, transform_indices = @transform_2, window_bounds = array<i64: 32, 1>}, {pipeline_mode = #tpu.pipeline_mode<synchronous>, transform_indices = @transform_3, window_bounds = array<i64: 32, 32>}, {pipeline_mode = #tpu.pipeline_mode<synchronous>, transform_indices = @transform_4, window_bounds = array<i64: 32, 1>}, {pipeline_mode = #tpu.pipeline_mode<synchronous>, transform_indices = @transform_5, window_bounds = array<i64: 8, 32>}, {pipeline_mode = #tpu.pipeline_mode<synchronous>, transform_indices = @transform_6, window_bounds = array<i64: 8, 1>}, {transform_indices = @transform_7, window_bounds = array<i64: 8, 128>}]} {
    %c0 = arith.constant 0 : index
    %c0_0 = arith.constant 0 : index
    %0 = vector.load %arg1[%c0, %c0_0] : memref<16x128xf32, #tpu.memory_space<vmem>>, vector<16x128xf32>
    %c0_1 = arith.constant 0 : index
    %c0_2 = arith.constant 0 : index
    %1 = vector.load %arg2[%c0_1, %c0_2] : memref<32x16xf32, #tpu.memory_space<vmem>>, vector<32x16xf32>
    %cst = arith.constant dense<0.000000e+00> : vector<32x128xf32>
    %2 = tpu.matmul %1, %0, %cst {dimension_numbers = #tpu.dot_dimension_numbers<[1], [0], [0], [1], [0, 0, 1, 1], [], []>} : vector<32x16xf32>, vector<16x128xf32>, vector<32x128xf32> -> vector<32x128xf32>
    %c0_3 = arith.constant 0 : index
    %c0_4 = arith.constant 0 : index
    %3 = vector.load %arg3[%c0_3, %c0_4] : memref<32x1xf32, #tpu.memory_space<vmem>>, vector<32x1xf32>
    %4 = vector.broadcast %3 : vector<32x1xf32> to vector<32x128xf32>
    %5 = arith.addf %2, %4 : vector<32x128xf32>
    %cst_5 = arith.constant 0.000000e+00 : f32
    %6 = vector.broadcast %cst_5 : f32 to vector<32x128xf32>
    %7 = arith.maximumf %5, %6 : vector<32x128xf32>
    %c0_6 = arith.constant 0 : index
    %c0_7 = arith.constant 0 : index
    %8 = vector.load %arg4[%c0_6, %c0_7] : memref<32x32xf32, #tpu.memory_space<vmem>>, vector<32x32xf32>
    %cst_8 = arith.constant dense<0.000000e+00> : vector<32x128xf32>
    %9 = tpu.matmul %8, %7, %cst_8 {dimension_numbers = #tpu.dot_dimension_numbers<[1], [0], [0], [1], [0, 0, 1, 1], [], []>} : vector<32x32xf32>, vector<32x128xf32>, vector<32x128xf32> -> vector<32x128xf32>
    %c0_9 = arith.constant 0 : index
    %c0_10 = arith.constant 0 : index
    %10 = vector.load %arg5[%c0_9, %c0_10] : memref<32x1xf32, #tpu.memory_space<vmem>>, vector<32x1xf32>
    %11 = vector.broadcast %10 : vector<32x1xf32> to vector<32x128xf32>
    %12 = arith.addf %9, %11 : vector<32x128xf32>
    %cst_11 = arith.constant 0.000000e+00 : f32
    %13 = vector.broadcast %cst_11 : f32 to vector<32x128xf32>
    %14 = arith.maximumf %12, %13 : vector<32x128xf32>
    %c0_12 = arith.constant 0 : index
    %c0_13 = arith.constant 0 : index
    %15 = vector.load %arg6[%c0_12, %c0_13] : memref<8x32xf32, #tpu.memory_space<vmem>>, vector<8x32xf32>
    %cst_14 = arith.constant dense<0.000000e+00> : vector<8x128xf32>
    %16 = tpu.matmul %15, %14, %cst_14 {dimension_numbers = #tpu.dot_dimension_numbers<[1], [0], [0], [1], [0, 0, 1, 1], [], []>} : vector<8x32xf32>, vector<32x128xf32>, vector<8x128xf32> -> vector<8x128xf32>
    %c0_15 = arith.constant 0 : index
    %c0_16 = arith.constant 0 : index
    %17 = vector.load %arg7[%c0_15, %c0_16] : memref<8x1xf32, #tpu.memory_space<vmem>>, vector<8x1xf32>
    %18 = vector.broadcast %17 : vector<8x1xf32> to vector<8x128xf32>
    %19 = arith.addf %16, %18 : vector<8x128xf32>
    %cst_17 = arith.constant dense<0xFF800000> : vector<128xf32>
    %20 = vector.multi_reduction <maximumf>, %19, %cst_17 [0] : vector<8x128xf32> to vector<128xf32>
    %21 = vector.shape_cast %20 : vector<128xf32> to vector<1x128xf32>
    %22 = vector.broadcast %21 : vector<1x128xf32> to vector<8x128xf32>
    %23 = arith.subf %19, %22 : vector<8x128xf32>
    %24 = math.exp %23 : vector<8x128xf32>
    %cst_18 = arith.constant dense<0.000000e+00> : vector<128xf32>
    %25 = vector.multi_reduction <add>, %24, %cst_18 [0] : vector<8x128xf32> to vector<128xf32>
    %26 = vector.shape_cast %25 : vector<128xf32> to vector<1x128xf32>
    %27 = tpu.reciprocal %26 {approx = true} : vector<1x128xf32> -> vector<1x128xf32>
    %28 = arith.mulf %26, %27 : vector<1x128xf32>
    %cst_19 = arith.constant 2.000000e+00 : f32
    %29 = vector.broadcast %cst_19 : f32 to vector<1x128xf32>
    %30 = arith.subf %29, %28 : vector<1x128xf32>
    %31 = arith.mulf %27, %30 : vector<1x128xf32>
    %32 = vector.broadcast %31 : vector<1x128xf32> to vector<8x128xf32>
    %33 = arith.mulf %24, %32 : vector<8x128xf32>
    %c0_20 = arith.constant 0 : index
    %c0_21 = arith.constant 0 : index
    %34 = vector.load %arg8[%c0_20, %c0_21] : memref<8x128xf32, #tpu.memory_space<vmem>>, vector<8x128xf32>
    tpu.vector_store %arg8[%c0_20, %c0_21], %33 {strides = array<i32>} : memref<8x128xf32, #tpu.memory_space<vmem>>, vector<8x128xf32>,
    return
  }
  func.func @transform_0(%arg0: i32) -> (i32, i32) {
    %c0_i32 = arith.constant 0 : i32
    %c0_i32_0 = arith.constant 0 : i32
    return %c0_i32, %arg0 : i32, i32
  }
  func.func @transform_1(%arg0: i32) -> (i32, i32) {
    %c0_i32 = arith.constant 0 : i32
    %c0_i32_0 = arith.constant 0 : i32
    %c0_i32_1 = arith.constant 0 : i32
    return %c0_i32, %c0_i32_0 : i32, i32
  }
  func.func @transform_2(%arg0: i32) -> (i32, i32) {
    %c0_i32 = arith.constant 0 : i32
    %c0_i32_0 = arith.constant 0 : i32
    %c0_i32_1 = arith.constant 0 : i32
    return %c0_i32, %c0_i32_0 : i32, i32
  }
  func.func @transform_3(%arg0: i32) -> (i32, i32) {
    %c0_i32 = arith.constant 0 : i32
    %c0_i32_0 = arith.constant 0 : i32
    %c0_i32_1 = arith.constant 0 : i32
    return %c0_i32, %c0_i32_0 : i32, i32
  }
  func.func @transform_4(%arg0: i32) -> (i32, i32) {
    %c0_i32 = arith.constant 0 : i32
    %c0_i32_0 = arith.constant 0 : i32
    %c0_i32_1 = arith.constant 0 : i32
    return %c0_i32, %c0_i32_0 : i32, i32
  }
  func.func @transform_5(%arg0: i32) -> (i32, i32) {
    %c0_i32 = arith.constant 0 : i32
    %c0_i32_0 = arith.constant 0 : i32
    %c0_i32_1 = arith.constant 0 : i32
    return %c0_i32, %c0_i32_0 : i32, i32
  }
  func.func @transform_6(%arg0: i32) -> (i32, i32) {
    %c0_i32 = arith.constant 0 : i32
    %c0_i32_0 = arith.constant 0 : i32
    %c0_i32_1 = arith.constant 0 : i32
    return %c0_i32, %c0_i32_0 : i32, i32
  }
  func.func @transform_7(%arg0: i32) -> (i32, i32) {
    %c0_i32 = arith.constant 0 : i32
    %c0_i32_0 = arith.constant 0 : i32
    return %c0_i32, %arg0 : i32, i32
  }
}

</mosaic_0001>

<bundles_post_ra>
// kernel: tpu_custom_call.1
= control target key start
LH: loop header
LB: loop body
LE: loop exit
PB: predicated region body
PF: predicated region fallthrough
CT: control target
= control target key end

     0   :  { %vm57_vm0 = vcmask 130048   ;;  %v499_v4 = vmov 0   ;;  %s615_s0 = inlined_call_operand.vmem [shape: f32[16,128], index: 0, kind: input, shape index: {}]   ;;  %s616_s1 = inlined_call_operand.vmem [shape: f32[32,16], index: 1, kind: input, shape index: {}]   ;;  %s617_s2 = inlined_call_operand.vmem [shape: f32[32,1], index: 2, kind: input, shape index: {}]   ;;  %s618_s3 = inlined_call_operand.vmem [shape: f32[32,32], index: 3, kind: input, shape index: {}]   ;;  %s619_s4 = inlined_call_operand.vmem [shape: f32[32,1], index: 4, kind: input, shape index: {}]   ;;  %s620_s5 = inlined_call_operand.vmem [shape: f32[8,32], index: 5, kind: input, shape index: {}]   ;;  %s621_s6 = inlined_call_operand.vmem [shape: f32[8,1], index: 6, kind: input, shape index: {}]   ;;  %s622_s7 = inlined_call_operand.hbm [shape: f32[8,128], index: 7, kind: output, shape index: {}]  }
   0x1   :  { %v28_v0 = vld [vmem:[%s615_s0 + $0x8] sm:$0xff]  ;;  %v27_v1 = vld [vmem:[%s615_s0] sm:$0xff]  ;;  %471 = vset.pattern.permute.xlu0 %v499_v4  ;;  %v36_v5 = vld [vmem:[%s617_s2 + $0x18] sm:$0xff]  ;;  %472 = vset.pattern.permute.xlu1 %v499_v4 }
   0x2   :  { %v29_v2 = vld [vmem:[%s616_s1] sm:$0xff]  ;;  %432 = vmatprep.subr.mxu0 %v28_v0  ;;  %v30_v3 = vld [vmem:[%s616_s1 + $0x8] sm:$0xff]  ;;  %v31_v6 = vld [vmem:[%s616_s1 + $0x10] sm:$0xff]  ;;  %54 = vperm.xlu0 %471, %v36_v5  }
   0x3   :  { %436 = vmatprep.mubr.msk.f32.mxu0 %vm57_vm0, %v29_v2  ;;  %433 = vmatpush3.msra.mxu0 %v28_v0  ;;  %v34_v7 = vld [vmem:[%s617_s2 + $0x8] sm:$0xff]  ;;  %v35_v8 = vld [vmem:[%s617_s2 + $0x10] sm:$0xff] }
   0x4   :  { %434 = vmatprep.subr.mxu0 %v27_v1  ;;  %44 = vperm.xlu1 %472, %v34_v7  }
   0x5   :  { %435 = vmatpush3.msra.mxu0 %v27_v1 }
   0x6   :  { %437 = vmatmul.mubr.msk.f32.vlgmr.msra.gmra.mxu0 %vm57_vm0, %v30_v3 }
   0x7   :  { %12 = vsyncpa [#allocation3], 0  ;;  %439 = vmatprep.mubr.msk.f32.mxu0 %vm57_vm0, %v31_v6  ;;  %v32_v9 = vld [vmem:[%s616_s1 + $0x18] sm:$0xff]  ;;  %v33_v10 = vld [vmem:[%s617_s2] sm:$0xff]  ;;  %49 = vperm.xlu0 %471, %v35_v8   ;;  %vm187_vm1 = vcmask 261120   ;;  %v500_v36 = vmov 0.0  }
   0x8   :  { %v166_v11 = vld [vmem:[%s619_s4 + $0x18] sm:$0xff]  ;;  %39 = vperm.xlu1 %472, %v33_v10   ;;  %v165_v12 = vld [vmem:[%s619_s4 + $0x10] sm:$0xff]  ;;  %v164_v13 = vld [vmem:[%s619_s4 + $0x8] sm:$0xff]  ;;  %456 = vmatprep.subr.mxu0 %v500_v36  ;;  %vm501_vm2 = vmmov 0  }
   0x9   :  { %v163_v14 = vld [vmem:[%s619_s4] sm:$0xff]  ;;  %v160_v33 = vld [vmem:[%s618_s3 + $0x8] sm:$0xff]  ;;  %v161_v34 = vld [vmem:[%s618_s3 + $0x10] sm:$0xff] }
   0xa   :  { %440 = vmatmul.mubr.msk.f32.gmra.mxu0 %vm57_vm0, %v32_v9  ;;  %v290_v15 = vld [vmem:[%s621_s6] sm:$0xff]  ;;  %v162_v35 = vld [vmem:[%s618_s3 + $0x18] sm:$0xff] }
   0xb   :  { %184 = vperm.xlu0 %471, %v166_v11   ;;  %v159_v16 = vld [vmem:[%s618_s3] sm:$0xff]  ;;  %464 = vmatprep.mubr.msk.f32.mxu0 %vm501_vm2, %v500_v36 }
   0xc   :  { %179 = vperm.xlu1 %472, %v165_v12   ;;  %450 = vmatprep.mubr.msk.f32.mxu1 %vm187_vm1, %v159_v16  ;;  %v289_v53 = vld [vmem:[%s620_s5] sm:$0xff]  ;;  %s502_s5 = smov [#allocation2]  }
   0xd   :  { %s396_s11 = sshll.u32 %s502_s5, 4  ;;  %s397_s11 = int_to_ptr.vmem [resolvable:$true] %s396_s11 }
   0xe   :  { %s477_s12 = scalar_lea.vmem %s397_s11, 128  ;;  %p482_p1 = scmp.lt.s32.totalorder %s397_s11, %s397_s11 }
   0xf   :  { %174 = vperm.xlu0 %471, %v164_v13   ;;  %p478_p0 = scmp.ne.s32.totalorder %s397_s11, %s477_s12  ;;  %p483_p2 = scmp.lt.s32.totalorder %s477_s12, %s477_s12 }
  0x10   :  { %169 = vperm.xlu1 %472, %v163_v14  }
  0x11   :  { %p484_p3 = por %p483_p2, %p482_p1 }
  0x13   :  { %293 = vperm.xlu0 %471, %v290_v15   ;;  %p485_p4 = pnand %p484_p3, %p478_p0 }
  0x7d   :  { %v55_v17 = vpop.permute.xlu0 %54 }
  0x7f   :  { %v45_v19 = vpop.permute.xlu1 %44 }
  0x82   :  { %v50_v23 = vpop.permute.xlu0 %49 }
  0x83   :  { %v40_v28 = vpop.permute.xlu1 %39 }
  0x86   :  { %v185_v37 = vpop.permute.xlu0 %184 }
  0x87   :  { %v180_v39 = vpop.permute.xlu1 %179 }
  0x8a   :  { %v175_v43 = vpop.permute.xlu0 %174 }
  0x8b   :  { %v170_v48 = vpop.permute.xlu1 %169 }
  0x8e   :  { %v294_v54 = vpop.permute.xlu0 %293 }
  0xc6   :  { %v438_v18 = vpop.f32.mrf.mxu0 }
  0xc7   :  { %v142_v25 = vadd.f32 %v438_v18, %v45_v19 }
  0xc8   :  { %v136_v20 = vpop.f32.mrf.mxu0 }
  0xc9   :  { %v137_v29 = vadd.f32 %v136_v20, %v40_v28  ;;  %v156_v31 = vmax.f32 %v142_v25, 0.0 }
  0xca   :  { %v441_v21 = vpop.f32.mrf.mxu0 }
  0xcb   :  { %v152_v22 = vadd.f32 %v441_v21, %v55_v17  ;;  %v155_v32 = vmax.f32 %v137_v29, 0.0 }
  0xcc   :  { %v146_v24 = vpop.f32.mrf.mxu0 }
  0xcd   :  { %v158_v26 = vmax.f32 %v152_v22, 0.0  ;;  %v147_v27 = vadd.f32 %v146_v24, %v50_v23 }
  0xcf   :  { %v157_v30 = vmax.f32 %v147_v27, 0.0  ;;  %442 = vmatprep.subr.mxu1 %v158_v26 }
  0xd0   :  { %443 = vmatpush3.msra.mxu1 %v158_v26 }
  0xd1   :  { %444 = vmatprep.subr.mxu1 %v157_v30 }
  0xd2   :  { %445 = vmatpush3.msra.mxu1 %v157_v30 }
  0xd3   :  { %446 = vmatprep.subr.mxu1 %v156_v31 }
  0xd4   :  { %447 = vmatpush3.msra.mxu1 %v156_v31 }
  0xd5   :  { %448 = vmatprep.subr.mxu1 %v155_v32 }
  0xd6   :  { %449 = vmatpush3.msra.mxu1 %v155_v32 }
  0xd7   :  { %451 = vmatmul.mubr.msk.f32.vlgmr.msra.gmra.mxu1 %vm187_vm1, %v160_v33 }
  0xd8   :  { %453 = vmatprep.mubr.msk.f32.mxu1 %vm187_vm1, %v161_v34 }
  0xdb   :  { %454 = vmatmul.mubr.msk.f32.gmra.mxu1 %vm187_vm1, %v162_v35 }
 0x197   :  { %v452_v38 = vpop.f32.mrf.mxu1 }
 0x198   :  { %v272_v45 = vadd.f32 %v452_v38, %v175_v43 }
 0x199   :  { %v266_v40 = vpop.f32.mrf.mxu1 }
 0x19a   :  { %v267_v49 = vadd.f32 %v266_v40, %v170_v48  ;;  %v286_v51 = vmax.f32 %v272_v45, 0.0 }
 0x19b   :  { %v455_v41 = vpop.f32.mrf.mxu1 }
 0x19c   :  { %v282_v42 = vadd.f32 %v455_v41, %v185_v37  ;;  %v285_v52 = vmax.f32 %v267_v49, 0.0 }
 0x19d   :  { %v276_v44 = vpop.f32.mrf.mxu1 }
 0x19e   :  { %v288_v46 = vmax.f32 %v282_v42, 0.0  ;;  %v277_v47 = vadd.f32 %v276_v44, %v180_v39 }
 0x1a0   :  { %v287_v50 = vmax.f32 %v277_v47, 0.0  ;;  %457 = vmatpush3.msra.mxu0 %v288_v46 }
 0x1a1   :  { %458 = vmatprep.subr.mxu0 %v500_v36 }
 0x1a2   :  { %459 = vmatpush3.msra.mxu0 %v287_v50 }
 0x1a3   :  { %460 = vmatprep.subr.mxu0 %v500_v36 }
 0x1a4   :  { %461 = vmatpush3.msra.mxu0 %v286_v51 }
 0x1a5   :  { %462 = vmatprep.subr.mxu0 %v500_v36 }
 0x1a6   :  { %463 = vmatpush3.msra.mxu0 %v285_v52 }
 0x1a7   :  { %465 = vmatmul.mubr.msk.f32.vlgmr.msra.gmra.mxu0 %vm187_vm1, %v289_v53 }
 0x267   :  { %v365_v55 = vpop.f32.mrf.mxu0 }
 0x268   :  { %v366_v56 = vadd.f32 %v365_v55, %v294_v54 }
 0x269   :  { %v466_v57 = vpop.f32.mrf.mxu0 }
 0x26a   :  { %v369_v58 = vrot.slane %v366_v56, 4 }
 0x26c   :  { %v370_v59 = vmax.f32 %v366_v56, %v369_v58 }
 0x26e   :  { %v371_v60 = vrot.slane %v370_v59, 2 }
 0x270   :  { %v372_v61 = vmax.f32 %v370_v59, %v371_v60 }
 0x272   :  { %v373_v62 = vrot.slane %v372_v61, 1 }
 0x274   :  { %v374_v63 = vmax.f32 %v372_v61, %v373_v62 }
 0x276   :  { %v375_v0 = vsub.f32 %v366_v56, %v374_v63 }
 0x278   :  { %v376_v1 = vmul.f32 1.442695, %v375_v0 }
 0x27a   :  { %473 = vpow2.f32 %v376_v1 }
 0x287   :  { %v474_v2 = vpop.eup %473 }
 0x288   :  { %v378_v3 = vrot.slane %v474_v2, 4 }
 0x28a   :  { %v379_v4 = vadd.f32 %v474_v2, %v378_v3 }
 0x28c   :  { %v380_v5 = vrot.slane %v379_v4, 2 }
 0x28e   :  { %v381_v6 = vadd.f32 %v380_v5, %v379_v4 }
 0x290   :  { %v382_v7 = vrot.slane %v381_v6, 1 }
 0x292   :  { %v383_v8 = vadd.f32 %v382_v7, %v381_v6 }
 0x294   :  { %475 = vrcp.f32 %v383_v8 }
 0x2a1   :  { %v476_v9 = vpop.eup %475 }
 0x2a2   :  { %v385_v10 = vmul.f32 %v476_v9, %v383_v8 }
 0x2a4   :  { %v386_v11 = vsub.f32 2.0, %v385_v10 }
 0x2a6   :  { %v387_v12 = vmul.f32 %v476_v9, %v386_v11 }
 0x2a8   :  { %v388_v13 = vmul.f32 %v474_v2, %v387_v12 }
 0x2aa   :  { %389 = vst [vmem:[#allocation2] sm:$0xff] %v388_v13 }
 0x2ab   :  { %488 = shalt.err (!%p485_p4)
}
 0x2ac   :  { %399 = dma.vmem_to_hbm [thread:$0]  %s397_s11, 128, %s622_s7, [#allocation3]  }
 0x2ad   :  { %497 = dma.done.wait [#allocation3], 128  }
 0x2ae   :  { %498 = vsyncadd [#allocation3], 4294967168 }
 0x2af   :  { %403 = vsyncpa [#allocation3], 1 }

</bundles_post_ra>
